<compile_context>
chip_gen: v5e
topology: v5e:2x2
jax: 0.10.0
libtpu: 0.0.40
codegen_flags: <defaults>
</compile_context>

<pallas_src>
import jax
import jax.numpy as jnp
from jax.experimental import pallas as pl
from jax.experimental.pallas import tpu as pltpu


def _round_up(x, m):
    return (x + m - 1) // m * m


def critic_kernel(state_ref, action_ref, w1s_ref, w1a_ref, b1_ref,
                  w2_ref, b2_ref, w3_ref, b3_ref, o_ref):
    bf16 = jnp.bfloat16

    # Layer 1: split matmul replaces the concat ([state | action] @ W1).
    # Two MXU passes accumulating into one f32 result.
    h1 = jnp.dot(state_ref[...].astype(bf16), w1s_ref[...],
                 preferred_element_type=jnp.float32)
    h1 = h1 + jnp.dot(action_ref[...].astype(bf16), w1a_ref[...],
                      preferred_element_type=jnp.float32)
    h1 = jnp.maximum(h1 + b1_ref[...], 0.0)                    # f32 epilogue

    # Layer 2: bf16 MXU matmul, f32 accumulate + epilogue.
    h2 = jnp.dot(h1.astype(bf16), w2_ref[...],
                 preferred_element_type=jnp.float32)
    h2 = jnp.maximum(h2 + b2_ref[...], 0.0)

    # Layer 3 (256 -> 1): VPU multiply + XLU cross-lane sum instead of an
    # N=1 MXU matmul; bias is a true scalar read from SMEM.
    w3 = w3_ref[...].astype(jnp.float32)                       # (1, 256)
    q = jnp.sum(h2 * w3, axis=-1, keepdims=True) + b3_ref[0]   # (bt, 1)
    o_ref[...] = q.astype(o_ref.dtype)


def critic_forward(state, action, params, *, batch_tile=256):
    """state: (B, state_dim), action: (B, action_dim) -> q_value: (B, 1).

    batch_tile: rows per grid step (MXU height). 256 for v6e/v7x, 128 for v5e.
    """
    w1s, w1a, b1, w2, b2, w3, b3 = params
    B, state_dim = state.shape
    action_dim = action.shape[1]
    in_dim = state_dim + action_dim
    hidden = w2.shape[0]

    # Pad batch to a sublane multiple and tile it over the grid.  Weights use a
    # constant index_map -> DMA'd once, VMEM-resident across all grid steps.
    bt = min(batch_tile, _round_up(B, 8))
    Bp = _round_up(B, bt)
    if Bp != B:
        pad = Bp - B
        state = jnp.pad(state, ((0, pad), (0, 0)))
        action = jnp.pad(action, ((0, pad), (0, 0)))
    grid = (Bp // bt,)

    flops = 2 * Bp * (in_dim * hidden + hidden * hidden + hidden)
    bytes_accessed = (
        (in_dim * hidden + hidden * hidden + hidden) * 2   # bf16 weights
        + 2 * hidden * 4 + 4                               # f32 biases
        + Bp * in_dim * 4 + Bp * 4                         # activations in/out
    )

    const2 = lambda i: (0, 0)   # weight blocks: same tile every grid step
    batch2 = lambda i: (i, 0)   # activation/output blocks: walk the batch

    out = pl.pallas_call(
        critic_kernel,
        out_shape=jax.ShapeDtypeStruct((Bp, 1), jnp.float32),
        grid_spec=pltpu.PrefetchScalarGridSpec(
            num_scalar_prefetch=0,
            grid=grid,
            in_specs=[
                pl.BlockSpec((bt, state_dim), batch2),        # state
                pl.BlockSpec((bt, action_dim), batch2),       # action
                pl.BlockSpec((state_dim, hidden), const2),    # w1_state
                pl.BlockSpec((action_dim, hidden), const2),   # w1_action
                pl.BlockSpec((1, hidden), const2),            # b1
                pl.BlockSpec((hidden, hidden), const2),       # w2
                pl.BlockSpec((1, hidden), const2),            # b2
                pl.BlockSpec((1, hidden), const2),            # w3 (row)
                pl.BlockSpec(memory_space=pltpu.MemorySpace.SMEM),  # b3 scalar
            ],
            out_specs=pl.BlockSpec((bt, 1), batch2),
        ),
        compiler_params=pltpu.CompilerParams(
            dimension_semantics=("parallel",)),   # shards across v7x's 2 TCs
        cost_estimate=pl.CostEstimate(
            flops=flops, transcendentals=0, bytes_accessed=bytes_accessed),
    )(state, action, w1s, w1a, b1, w2, b2, w3, b3)

    return out[:B] if Bp != B else out


def init_critic_params(key, state_dim, action_dim, hidden=256):
    """PyTorch nn.Linear-style init (uniform +/- 1/sqrt(fan_in)).

    Matmul weights stored (in_features, out_features) in bf16; W1 is split into
    its state / action row blocks (no concat anywhere); w3 is a (1, hidden) row
    for the in-kernel VPU reduction; b3 is a 1-D f32[1] scalar bound for SMEM.
    """
    def linear(key, fan_in, fan_out):
        kw, kb = jax.random.split(key)
        bound = 1.0 / jnp.sqrt(float(fan_in))
        w = jax.random.uniform(kw, (fan_in, fan_out), jnp.float32, -bound, bound)
        b = jax.random.uniform(kb, (1, fan_out), jnp.float32, -bound, bound)
        return w, b

    k1, k2, k3 = jax.random.split(key, 3)
    in_dim = state_dim + action_dim
    w1, b1 = linear(k1, in_dim, hidden)
    w2, b2 = linear(k2, hidden, hidden)
    w3, b3 = linear(k3, hidden, 1)

    w1s = w1[:state_dim].astype(jnp.bfloat16)
    w1a = w1[state_dim:].astype(jnp.bfloat16)
    w2 = w2.astype(jnp.bfloat16)
    w3 = w3.reshape(1, hidden).astype(jnp.bfloat16)
    b3 = b3.reshape(1)                                   # 1-D scalar for SMEM
    return (w1s, w1a, b1, w2, b2, w3, b3)


def critic_reference(state, action, params):
    """Pure-JAX reference doing the exact same (bf16-weight) math."""
    w1s, w1a, b1, w2, b2, w3, b3 = params
    bf16 = jnp.bfloat16
    h1 = (jnp.dot(state.astype(bf16), w1s, preferred_element_type=jnp.float32)
          + jnp.dot(action.astype(bf16), w1a, preferred_element_type=jnp.float32))
    h1 = jnp.maximum(h1 + b1, 0.0)
    h2 = jnp.dot(h1.astype(bf16), w2, preferred_element_type=jnp.float32)
    h2 = jnp.maximum(h2 + b2, 0.0)
    q = jnp.sum(h2 * w3.astype(jnp.float32), axis=-1, keepdims=True) + b3
    return q


if __name__ == "__main__":
    key = jax.random.PRNGKey(0)
    k_params, k_state, k_action = jax.random.split(key, 3)

    batch = 8
    state_dim = 24
    action_dim = 8

    params = init_critic_params(k_params, state_dim, action_dim)
    state = jax.random.normal(k_state, (batch, state_dim), jnp.float32)
    action = jax.random.normal(k_action, (batch, action_dim), jnp.float32)

    q = critic_forward(state, action, params)
    jax.block_until_ready(q)

    q_ref = critic_reference(state, action, params)
    assert q.shape == (batch, 1), q.shape
    assert jnp.allclose(q, q_ref, atol=1e-3, rtol=1e-3), "mismatch vs reference"

    print("KERNEL_OK")
</pallas_src>

<mosaic_0001>
module attributes {stable_mosaic.version = 11 : i64} {
  func.func @critic_kernel(%arg0: i32, %arg1: memref<8x24xf32, #tpu.memory_space<vmem>>, %arg2: memref<8x8xf32, #tpu.memory_space<vmem>>, %arg3: memref<24x256xbf16, #tpu.memory_space<vmem>>, %arg4: memref<8x256xbf16, #tpu.memory_space<vmem>>, %arg5: memref<1x256xf32, #tpu.memory_space<vmem>>, %arg6: memref<256x256xbf16, #tpu.memory_space<vmem>>, %arg7: memref<1x256xf32, #tpu.memory_space<vmem>>, %arg8: memref<1x256xbf16, #tpu.memory_space<vmem>>, %arg9: memref<1xf32, #tpu.memory_space<smem>>, %arg10: memref<8x1xf32, #tpu.memory_space<vmem>>) attributes {dimension_semantics = [#tpu.dimension_semantics<parallel>], iteration_bounds = array<i64: 1>, scalar_prefetch = 0 : i64, scratch_operands = 0 : i64, tpu.core_type = #tpu.core_type<tc>, window_params = [{transform_indices = @transform_0, window_bounds = array<i64: 8, 24>}, {transform_indices = @transform_1, window_bounds = array<i64: 8, 8>}, {pipeline_mode = #tpu.pipeline_mode<synchronous>, transform_indices = @transform_2, window_bounds = array<i64: 24, 256>}, {pipeline_mode = #tpu.pipeline_mode<synchronous>, transform_indices = @transform_3, window_bounds = array<i64: 8, 256>}, {pipeline_mode = #tpu.pipeline_mode<synchronous>, transform_indices = @transform_4, window_bounds = array<i64: 1, 256>}, {pipeline_mode = #tpu.pipeline_mode<synchronous>, transform_indices = @transform_5, window_bounds = array<i64: 256, 256>}, {pipeline_mode = #tpu.pipeline_mode<synchronous>, transform_indices = @transform_6, window_bounds = array<i64: 1, 256>}, {pipeline_mode = #tpu.pipeline_mode<synchronous>, transform_indices = @transform_7, window_bounds = array<i64: 1, 256>}, {transform_indices = @transform_8, window_bounds = array<i64: 1>}, {transform_indices = @transform_9, window_bounds = array<i64: 8, 1>}]} {
    %c0 = arith.constant 0 : index
    %c0_0 = arith.constant 0 : index
    %0 = vector.load %arg1[%c0, %c0_0] : memref<8x24xf32, #tpu.memory_space<vmem>>, vector<8x24xf32>
    %1 = arith.truncf %0 : vector<8x24xf32> to vector<8x24xbf16>
    %c0_1 = arith.constant 0 : index
    %c0_2 = arith.constant 0 : index
    %2 = vector.load %arg3[%c0_1, %c0_2] : memref<24x256xbf16, #tpu.memory_space<vmem>>, vector<24x256xbf16>
    %cst = arith.constant dense<0.000000e+00> : vector<8x256xf32>
    %3 = tpu.matmul %1, %2, %cst {dimension_numbers = #tpu.dot_dimension_numbers<[1], [0], [0], [1], [0, 0, 1, 1], [], []>} : vector<8x24xbf16>, vector<24x256xbf16>, vector<8x256xf32> -> vector<8x256xf32>
    %c0_3 = arith.constant 0 : index
    %c0_4 = arith.constant 0 : index
    %4 = vector.load %arg2[%c0_3, %c0_4] : memref<8x8xf32, #tpu.memory_space<vmem>>, vector<8x8xf32>
    %5 = arith.truncf %4 : vector<8x8xf32> to vector<8x8xbf16>
    %c0_5 = arith.constant 0 : index
    %c0_6 = arith.constant 0 : index
    %6 = vector.load %arg4[%c0_5, %c0_6] : memref<8x256xbf16, #tpu.memory_space<vmem>>, vector<8x256xbf16>
    %cst_7 = arith.constant dense<0.000000e+00> : vector<8x256xf32>
    %7 = tpu.matmul %5, %6, %cst_7 {dimension_numbers = #tpu.dot_dimension_numbers<[1], [0], [0], [1], [0, 0, 1, 1], [], []>} : vector<8x8xbf16>, vector<8x256xbf16>, vector<8x256xf32> -> vector<8x256xf32>
    %8 = arith.addf %3, %7 : vector<8x256xf32>
    %c0_8 = arith.constant 0 : index
    %c0_9 = arith.constant 0 : index
    %9 = vector.load %arg5[%c0_8, %c0_9] : memref<1x256xf32, #tpu.memory_space<vmem>>, vector<1x256xf32>
    %10 = vector.broadcast %9 : vector<1x256xf32> to vector<8x256xf32>
    %11 = arith.addf %8, %10 : vector<8x256xf32>
    %cst_10 = arith.constant 0.000000e+00 : f32
    %12 = vector.broadcast %cst_10 : f32 to vector<8x256xf32>
    %13 = arith.maximumf %11, %12 : vector<8x256xf32>
    %14 = arith.truncf %13 : vector<8x256xf32> to vector<8x256xbf16>
    %c0_11 = arith.constant 0 : index
    %c0_12 = arith.constant 0 : index
    %15 = vector.load %arg6[%c0_11, %c0_12] : memref<256x256xbf16, #tpu.memory_space<vmem>>, vector<256x256xbf16>
    %cst_13 = arith.constant dense<0.000000e+00> : vector<8x256xf32>
    %16 = tpu.matmul %14, %15, %cst_13 {dimension_numbers = #tpu.dot_dimension_numbers<[1], [0], [0], [1], [0, 0, 1, 1], [], []>} : vector<8x256xbf16>, vector<256x256xbf16>, vector<8x256xf32> -> vector<8x256xf32>
    %c0_14 = arith.constant 0 : index
    %c0_15 = arith.constant 0 : index
    %17 = vector.load %arg7[%c0_14, %c0_15] : memref<1x256xf32, #tpu.memory_space<vmem>>, vector<1x256xf32>
    %18 = vector.broadcast %17 : vector<1x256xf32> to vector<8x256xf32>
    %19 = arith.addf %16, %18 : vector<8x256xf32>
    %cst_16 = arith.constant 0.000000e+00 : f32
    %20 = vector.broadcast %cst_16 : f32 to vector<8x256xf32>
    %21 = arith.maximumf %19, %20 : vector<8x256xf32>
    %c0_17 = arith.constant 0 : index
    %c0_18 = arith.constant 0 : index
    %22 = vector.load %arg8[%c0_17, %c0_18] : memref<1x256xbf16, #tpu.memory_space<vmem>>, vector<1x256xbf16>
    %23 = arith.extf %22 : vector<1x256xbf16> to vector<1x256xf32>
    %24 = vector.broadcast %23 : vector<1x256xf32> to vector<8x256xf32>
    %25 = arith.mulf %21, %24 : vector<8x256xf32>
    %cst_19 = arith.constant dense<0.000000e+00> : vector<8xf32>
    %26 = vector.multi_reduction <add>, %25, %cst_19 [1] : vector<8x256xf32> to vector<8xf32>
    %27 = vector.shape_cast %26 : vector<8xf32> to vector<8x1xf32>
    %c0_20 = arith.constant 0 : index
    %28 = memref.load %arg9[%c0_20] : memref<1xf32, #tpu.memory_space<smem>>
    %29 = vector.broadcast %28 : f32 to vector<8x1xf32>
    %30 = arith.addf %27, %29 : vector<8x1xf32>
    %c0_21 = arith.constant 0 : index
    %c0_22 = arith.constant 0 : index
    %31 = vector.load %arg10[%c0_21, %c0_22] : memref<8x1xf32, #tpu.memory_space<vmem>>, vector<8x1xf32>
    tpu.vector_store %arg10[%c0_21, %c0_22], %30 {strides = array<i32>} : memref<8x1xf32, #tpu.memory_space<vmem>>, vector<8x1xf32>,
    return
  }
  func.func @transform_0(%arg0: i32) -> (i32, i32) {
    %c0_i32 = arith.constant 0 : i32
    %c0_i32_0 = arith.constant 0 : i32
    return %arg0, %c0_i32 : i32, i32
  }
  func.func @transform_1(%arg0: i32) -> (i32, i32) {
    %c0_i32 = arith.constant 0 : i32
    %c0_i32_0 = arith.constant 0 : i32
    return %arg0, %c0_i32 : i32, i32
  }
  func.func @transform_2(%arg0: i32) -> (i32, i32) {
    %c0_i32 = arith.constant 0 : i32
    %c0_i32_0 = arith.constant 0 : i32
    %c0_i32_1 = arith.constant 0 : i32
    return %c0_i32, %c0_i32_0 : i32, i32
  }
  func.func @transform_3(%arg0: i32) -> (i32, i32) {
    %c0_i32 = arith.constant 0 : i32
    %c0_i32_0 = arith.constant 0 : i32
    %c0_i32_1 = arith.constant 0 : i32
    return %c0_i32, %c0_i32_0 : i32, i32
  }
  func.func @transform_4(%arg0: i32) -> (i32, i32) {
    %c0_i32 = arith.constant 0 : i32
    %c0_i32_0 = arith.constant 0 : i32
    %c0_i32_1 = arith.constant 0 : i32
    return %c0_i32, %c0_i32_0 : i32, i32
  }
  func.func @transform_5(%arg0: i32) -> (i32, i32) {
    %c0_i32 = arith.constant 0 : i32
    %c0_i32_0 = arith.constant 0 : i32
    %c0_i32_1 = arith.constant 0 : i32
    return %c0_i32, %c0_i32_0 : i32, i32
  }
  func.func @transform_6(%arg0: i32) -> (i32, i32) {
    %c0_i32 = arith.constant 0 : i32
    %c0_i32_0 = arith.constant 0 : i32
    %c0_i32_1 = arith.constant 0 : i32
    return %c0_i32, %c0_i32_0 : i32, i32
  }
  func.func @transform_7(%arg0: i32) -> (i32, i32) {
    %c0_i32 = arith.constant 0 : i32
    %c0_i32_0 = arith.constant 0 : i32
    %c0_i32_1 = arith.constant 0 : i32
    return %c0_i32, %c0_i32_0 : i32, i32
  }
  func.func @transform_8(%arg0: i32) -> i32 {
    %c0_i32 = arith.constant 0 : i32
    %c0_i32_0 = arith.constant 0 : i32
    return %c0_i32 : i32
  }
  func.func @transform_9(%arg0: i32) -> (i32, i32) {
    %c0_i32 = arith.constant 0 : i32
    %c0_i32_0 = arith.constant 0 : i32
    return %arg0, %c0_i32 : i32, i32
  }
}

</mosaic_0001>

<bundles_post_ra>
// kernel: tpu_custom_call.1
= control target key start
LH: loop header
LB: loop body
LE: loop exit
PB: predicated region body
PF: predicated region fallthrough
CT: control target
= control target key end

     0   :  { %15 = vsyncpa [#allocation4], 0  ;;  %s897_s0 = inlined_call_operand.hbm [shape: f32[8,24], index: 0, kind: input, shape index: {}]   ;;  %s898_s1 = inlined_call_operand.hbm [shape: f32[8,8], index: 1, kind: input, shape index: {}]   ;;  %s899_s2 = inlined_call_operand.hbm [shape: bf16[24,256], index: 2, kind: input, shape index: {}]   ;;  %s900_s3 = inlined_call_operand.hbm [shape: bf16[8,256], index: 3, kind: input, shape index: {}]   ;;  %s901_s4 = inlined_call_operand.vmem [shape: f32[1,256], index: 4, kind: input, shape index: {}]   ;;  %s902_s5 = inlined_call_operand.hbm [shape: bf16[256,256], index: 5, kind: input, shape index: {}]   ;;  %s903_s6 = inlined_call_operand.vmem [shape: f32[1,256], index: 6, kind: input, shape index: {}]   ;;  %s904_s7 = inlined_call_operand.vmem [shape: bf16[1,256], index: 7, kind: input, shape index: {}]   ;;  %s905_s8 = inlined_call_operand.<no memory space> [shape: f32[1], index: 8, kind: input, shape index: {}]   ;;  %s906_s9 = inlined_call_operand.vmem [shape: f32[8,1], index: 9, kind: output, shape index: {}]  }
   0x1   :  { %16 = vsyncpa [#allocation6], 0  ;;  %s34_s11 = sshll.u32 %s898_s1, 4  ;;  %s35_s11 = int_to_ptr.hbm [resolvable:$true] %s34_s11 }
   0x2   :  { %17 = vsyncpa [#allocation9], 0  ;;  %s804_s12 = smov [#allocation5]   ;;  %s58_s16 = sshll.u32 %s900_s3, 4  ;;  %s59_s16 = int_to_ptr.hbm [resolvable:$true] %s58_s16 }
   0x3   :  { %s36_s13 = sshll.u32 %s804_s12, 4  ;;  %s805_s17 = smov [#allocation8]   ;;  %s37_s13 = int_to_ptr.vmem [resolvable:$true] %s36_s13 }
   0x4   :  { %39 = dma.hbm_to_vmem [thread:$0]  %s35_s11, 128, %s37_s13, [#allocation6]  }
   0x5   :  { %s60_s18 = sshll.u32 %s805_s17, 4  ;;  %s23_s21 = sshll.u32 %s897_s0, 4  ;;  %s61_s18 = int_to_ptr.vmem [resolvable:$true] %s60_s18  ;;  %s24_s21 = int_to_ptr.hbm [resolvable:$true] %s23_s21 }
   0x6   :  { %63 = dma.hbm_to_vmem [thread:$0]  %s59_s16, 128, %s61_s18, [#allocation9]  }
   0x7   :  { %s44_s23 = sshll.u32 %s899_s2, 4  ;;  %s806_s24 = smov [#allocation3]   ;;  %s45_s23 = int_to_ptr.hbm [resolvable:$true] %s44_s23 }
   0x8   :  { %s25_s25 = sshll.u32 %s806_s24, 4  ;;  %s807_s3 = smov [#allocation7]   ;;  %s26_s25 = int_to_ptr.vmem [resolvable:$true] %s25_s25 }
   0x9   :  { %28 = dma.hbm_to_vmem [thread:$0]  %s24_s21, 128, %s26_s25, [#allocation4]  }
   0xa   :  { %s46_s26 = sshll.u32 %s807_s3, 4  ;;  %s808_s27 = smov 128   ;;  %s47_s26 = int_to_ptr.vmem [resolvable:$true] %s46_s26 }
   0xb   :  { %s809_s28 = smov 8   ;;  %s70_s30 = sshll.u32 %s902_s5, 4  ;;  %s71_s30 = int_to_ptr.hbm [resolvable:$true] %s70_s30 }
   0xc   :  { %52 = dma.hbm_to_vmem [thread:$0]  %s45_s23, 384, %s47_s26, [#allocation6], %s808_s27, %s808_s27, %s809_s28  }
   0xd   :  { %s810_s10 = smov [#allocation10]  }
   0xe   :  { %s72_s11 = sshll.u32 %s810_s10, 4  ;;  %s73_s11 = int_to_ptr.vmem [resolvable:$true] %s72_s11 }
   0xf   :  { %78 = dma.hbm_to_vmem [thread:$0]  %s71_s30, 4096, %s73_s11, [#allocation9], %s808_s27, %s808_s27, %s809_s28  }
  0x10   :  { %798 = dma.done.wait [#allocation4], 128  }
  0x11   :  { %799 = vsyncadd [#allocation4], 4294967168 }
  0x12   :  { %800 = dma.done.wait [#allocation6], 512  }
  0x13   :  { %801 = vsyncadd [#allocation6], 4294966784 }
  0x14   :  { %802 = dma.done.wait [#allocation9], 4224  }
  0x15   :  { %803 = vsyncadd [#allocation9], 4294963072  ;;  %v110_v0 = vld [vmem:[#allocation7 + $0x10] sm:$0xff]  ;;  %v113_v1 = vld [vmem:[#allocation8] sm:$0xff]  ;;  %vm123_vm0 = vcmask 1043456   ;;  %vm119_vm1 = vcmask 64512  }
  0x16   :  { %v163_v2 = vunpack.c.l.b16 %v110_v0  ;;  %v164_v3 = vunpack.c.h.b16 %v110_v0  ;;  %v115_v4 = vunpack.c.l.b16 %v113_v1  ;;  %v116_v5 = vunpack.c.h.b16 %v113_v1  ;;  %v501_v6 = vld [vmem:[#allocation7] sm:$0xf]  ;;  %v638_v7 = vld [vmem:[#allocation7 + $0x4] sm:$0xf0]  ;;  %v637_v8 = vld [vmem:[#allocation7 + $0x4] sm:$0xf] }
  0x17   :  { %v503_v9 = vld [vmem:[#allocation7 + $0x8] sm:$0xf0]  ;;  %v111_v10 = vld [vmem:[#allocation5] sm:$0xff]  ;;  %v567_v11 = vld [vmem:[#allocation10 + $0x70] sm:$0xf]  ;;  %v502_v29 = vor.u32 %v638_v7, %v501_v6  ;;  %vm171_vm2 = vcmask 195584  }
  0x18   :  { %v167_v12 = vpack.c.b16 %v163_v2, %v163_v2  ;;  %v168_v13 = vpack.c.b16 %v164_v3, %v164_v3  ;;  %v117_v14 = vpack.c.b16 %v115_v4, %v115_v4  ;;  %v118_v15 = vpack.c.b16 %v116_v5, %v116_v5  ;;  %v654_v16 = vld [vmem:[#allocation10 + $0x74] sm:$0xf0]  ;;  %v631_v17 = vld [vmem:[#allocation10 + $0xf0] sm:$0xf]  ;;  %v653_v21 = vld [vmem:[#allocation10 + $0x74] sm:$0xf] }
  0x19   :  { %v670_v18 = vld [vmem:[#allocation10 + $0xf4] sm:$0xf0]  ;;  %v568_v19 = vor.u32 %v654_v16, %v567_v11  ;;  %v569_v22 = vld [vmem:[#allocation10 + $0x78] sm:$0xf0]  ;;  %v669_v23 = vld [vmem:[#allocation10 + $0xf4] sm:$0xf]  ;;  %v506_v30 = vor.u32 %v637_v8, %v503_v9  ;;  %v112_v33 = vpack.c.bf16 %v111_v10, %v111_v10 }
  0x1a   :  { %v632_v20 = vor.u32 %v670_v18, %v631_v17  ;;  %v176_v24 = vsel %vm123_vm0, %v167_v12, 0  ;;  %v179_v25 = vsel %vm123_vm0, %v168_v13, 0  ;;  %v125_v26 = vsel %vm123_vm0, %v117_v14, 0  ;;  %v633_v28 = vld [vmem:[#allocation10 + $0xf8] sm:$0xf0]  ;;  %v106_v31 = vld [vmem:[#allocation3] sm:$0xff] }
  0x1b   :  { %v128_v27 = vsel %vm123_vm0, %v118_v15, 0  ;;  %187 = vmatpush.bf16.msra.mxu2 %v176_v24  ;;  %200 = vmatpush.bf16.msra.mxu3 %v179_v25  ;;  %v559_v32 = vld [vmem:[#allocation10 + $0x60] sm:$0xf]  ;;  %v652_v34 = vld [vmem:[#allocation10 + $0x64] sm:$0xf0]  ;;  %v572_v37 = vor.u32 %v653_v21, %v569_v22  ;;  %v636_v38 = vor.u32 %v669_v23, %v633_v28  ;;  %v107_v40 = vpack.c.bf16 %v106_v31, %v106_v31 }
  0x1c   :  { %137 = vmatpush.bf16.msra.mxu0 %v125_v26  ;;  %150 = vmatpush.bf16.msra.mxu1 %v128_v27  ;;  %v623_v35 = vld [vmem:[#allocation10 + $0xe0] sm:$0xf]  ;;  %v668_v36 = vld [vmem:[#allocation10 + $0xe4] sm:$0xf0]  ;;  %v651_v39 = vld [vmem:[#allocation10 + $0x64] sm:$0xf]  ;;  %v560_v44 = vor.u32 %v652_v34, %v559_v32 }
  0x1d   :  { %v561_v41 = vld [vmem:[#allocation10 + $0x68] sm:$0xf0]  ;;  %v667_v42 = vld [vmem:[#allocation10 + $0xe4] sm:$0xf]  ;;  %v624_v45 = vor.u32 %v668_v36, %v623_v35  ;;  %v551_v46 = vld [vmem:[#allocation10 + $0x50] sm:$0xf] }
  0x1e   :  { %v625_v43 = vld [vmem:[#allocation10 + $0xe8] sm:$0xf0]  ;;  %v650_v47 = vld [vmem:[#allocation10 + $0x54] sm:$0xf0]  ;;  %v615_v48 = vld [vmem:[#allocation10 + $0xd0] sm:$0xf]  ;;  %v564_v50 = vor.u32 %v651_v39, %v561_v41 }
  0x1f   :  { %188 = vmatpush.bf16.msra.mxu2 %v502_v29  ;;  %201 = vmatpush.bf16.msra.mxu3 %v506_v30  ;;  %v666_v49 = vld [vmem:[#allocation10 + $0xd4] sm:$0xf0]  ;;  %v628_v51 = vor.u32 %v667_v42, %v625_v43  ;;  %v649_v52 = vld [vmem:[#allocation10 + $0x54] sm:$0xf]  ;;  %v553_v53 = vld [vmem:[#allocation10 + $0x58] sm:$0xf0]  ;;  %v552_v56 = vor.u32 %v650_v47, %v551_v46 }
  0x20   :  { %417 = vmatpush.bf16.msrb.mxu0 %v568_v19  ;;  %430 = vmatpush.bf16.msrb.mxu1 %v632_v20  ;;  %v665_v54 = vld [vmem:[#allocation10 + $0xd4] sm:$0xf]  ;;  %v617_v55 = vld [vmem:[#allocation10 + $0xd8] sm:$0xf0]  ;;  %v616_v57 = vor.u32 %v666_v49, %v615_v48  ;;  %v543_v58 = vld [vmem:[#allocation10 + $0x40] sm:$0xf]  ;;  %v556_v62 = vor.u32 %v649_v52, %v553_v53 }
  0x21   :  { %497 = vmatmul.msk.bf16.vlgmr.msra.gmra.mxu0 %vm119_vm1, %v112_v33  ;;  %498 = vmatmul.msk.bf16.vlgmr.msra.gmra.mxu1 %vm119_vm1, %v112_v33  ;;  %v648_v59 = vld [vmem:[#allocation10 + $0x44] sm:$0xf0]  ;;  %v607_v60 = vld [vmem:[#allocation10 + $0xc0] sm:$0xf]  ;;  %v620_v63 = vor.u32 %v665_v54, %v617_v55  ;;  %v647_v0 = vld [vmem:[#allocation10 + $0x44] sm:$0xf] }
  0x22   :  { %507 = vmatmul.msk.bf16.vlgmr.msra.gmra.mxu2 %vm171_vm2, %v107_v40  ;;  %508 = vmatmul.msk.bf16.vlgmr.msra.gmra.mxu3 %vm171_vm2, %v107_v40  ;;  %v664_v61 = vld [vmem:[#allocation10 + $0xc4] sm:$0xf0]  ;;  %v545_v1 = vld [vmem:[#allocation10 + $0x48] sm:$0xf0]  ;;  %v663_v2 = vld [vmem:[#allocation10 + $0xc4] sm:$0xf]  ;;  %v544_v4 = vor.u32 %v648_v59, %v543_v58 }
  0x23   :  { %443 = vmatpush.bf16.msrb.mxu2 %v572_v37  ;;  %456 = vmatpush.bf16.msrb.mxu3 %v636_v38  ;;  %v609_v3 = vld [vmem:[#allocation10 + $0xc8] sm:$0xf0]  ;;  %v608_v5 = vor.u32 %v664_v61, %v607_v60  ;;  %v548_v6 = vor.u32 %v647_v0, %v545_v1  ;;  %v535_v8 = vld [vmem:[#allocation10 + $0x30] sm:$0xf]  ;;  %v646_v9 = vld [vmem:[#allocation10 + $0x34] sm:$0xf0] }
  0x24   :  { %418 = vmatpush.bf16.msrb.mxu0 %v560_v44  ;;  %431 = vmatpush.bf16.msrb.mxu1 %v624_v45  ;;  %v612_v7 = vor.u32 %v663_v2, %v609_v3  ;;  %v599_v10 = vld [vmem:[#allocation10 + $0xb0] sm:$0xf]  ;;  %v536_v11 = vor.u32 %v646_v9, %v535_v8  ;;  %v662_v12 = vld [vmem:[#allocation10 + $0xb4] sm:$0xf0]  ;;  %v645_v13 = vld [vmem:[#allocation10 + $0x34] sm:$0xf] }
  0x25   :  { %v537_v14 = vld [vmem:[#allocation10 + $0x38] sm:$0xf0]  ;;  %v600_v15 = vor.u32 %v662_v12, %v599_v10  ;;  %v661_v17 = vld [vmem:[#allocation10 + $0xb4] sm:$0xf]  ;;  %v527_v19 = vld [vmem:[#allocation10 + $0x20] sm:$0xf] }
  0x26   :  { %v540_v16 = vor.u32 %v645_v13, %v537_v14  ;;  %v601_v18 = vld [vmem:[#allocation10 + $0xb8] sm:$0xf0]  ;;  %v644_v21 = vld [vmem:[#allocation10 + $0x24] sm:$0xf0]  ;;  %v591_v22 = vld [vmem:[#allocation10 + $0xa0] sm:$0xf] }
  0x27   :  { %444 = vmatpush.bf16.msrb.mxu2 %v564_v50  ;;  %457 = vmatpush.bf16.msrb.mxu3 %v628_v51  ;;  %v604_v20 = vor.u32 %v661_v17, %v601_v18  ;;  %v660_v23 = vld [vmem:[#allocation10 + $0xa4] sm:$0xf0]  ;;  %v528_v24 = vor.u32 %v644_v21, %v527_v19  ;;  %v643_v26 = vld [vmem:[#allocation10 + $0x24] sm:$0xf]  ;;  %v529_v27 = vld [vmem:[#allocation10 + $0x28] sm:$0xf0] }
  0x28   :  { %419 = vmatpush.bf16.msrb.mxu0 %v552_v56  ;;  %432 = vmatpush.bf16.msrb.mxu1 %v616_v57  ;;  %v592_v25 = vor.u32 %v660_v23, %v591_v22  ;;  %v659_v28 = vld [vmem:[#allocation10 + $0xa4] sm:$0xf]  ;;  %v532_v29 = vor.u32 %v643_v26, %v529_v27  ;;  %v593_v30 = vld [vmem:[#allocation10 + $0xa8] sm:$0xf0]  ;;  %v519_v32 = vld [vmem:[#allocation10 + $0x10] sm:$0xf] }
  0x29   :  { %v596_v31 = vor.u32 %v659_v28, %v593_v30  ;;  %v642_v33 = vld [vmem:[#allocation10 + $0x14] sm:$0xf0]  ;;  %v583_v35 = vld [vmem:[#allocation10 + $0x90] sm:$0xf]  ;;  %v641_v38 = vld [vmem:[#allocation10 + $0x14] sm:$0xf] }
  0x2a   :  { %v520_v34 = vor.u32 %v642_v33, %v519_v32  ;;  %v658_v36 = vld [vmem:[#allocation10 + $0x94] sm:$0xf0]  ;;  %v521_v39 = vld [vmem:[#allocation10 + $0x18] sm:$0xf0]  ;;  %v657_v41 = vld [vmem:[#allocation10 + $0x94] sm:$0xf] }
  0x2b   :  { %445 = vmatpush.bf16.msrb.mxu2 %v556_v62  ;;  %458 = vmatpush.bf16.msrb.mxu3 %v620_v63  ;;  %v584_v37 = vor.u32 %v658_v36, %v583_v35  ;;  %v524_v40 = vor.u32 %v641_v38, %v521_v39  ;;  %v585_v42 = vld [vmem:[#allocation10 + $0x98] sm:$0xf0]  ;;  %v511_v44 = vld [vmem:[#allocation10] sm:$0xf]  ;;  %v640_v45 = vld [vmem:[#allocation10 + $0x4] sm:$0xf0] }
  0x2c   :  { %420 = vmatpush.bf16.msrb.mxu0 %v544_v4  ;;  %433 = vmatpush.bf16.msrb.mxu1 %v608_v5  ;;  %v588_v43 = vor.u32 %v657_v41, %v585_v42  ;;  %v575_v46 = vld [vmem:[#allocation10 + $0x80] sm:$0xf]  ;;  %v512_v47 = vor.u32 %v640_v45, %v511_v44  ;;  %v656_v48 = vld [vmem:[#allocation10 + $0x84] sm:$0xf0]  ;;  %v639_v49 = vld [vmem:[#allocation10 + $0x4] sm:$0xf] }
  0x2d   :  { %v513_v50 = vld [vmem:[#allocation10 + $0x8] sm:$0xf0]  ;;  %v576_v51 = vor.u32 %v656_v48, %v575_v46  ;;  %v655_v53 = vld [vmem:[#allocation10 + $0x84] sm:$0xf]  ;;  %v207_v58 = vld [vmem:[%s901_s4] sm:$0x3] }
  0x2e   :  { %v516_v52 = vor.u32 %v639_v49, %v513_v50  ;;  %v577_v54 = vld [vmem:[#allocation10 + $0x88] sm:$0xf0]  ;;  %v209_v59 = vperm.slane %v207_v58, 0  ;;  %v210_v62 = vperm.slane %v207_v58, 1  ;;  %v471_v13 = vld [vmem:[%s904_s7] sm:$0x3] }
  0x2f   :  { %446 = vmatpush.bf16.msrb.mxu2 %v548_v6  ;;  %459 = vmatpush.bf16.msrb.mxu3 %v612_v7  ;;  %v580_v55 = vor.u32 %v655_v53, %v577_v54  ;;  %v472_v17 = vunpack.c.l.bf16 %v471_v13  ;;  %vm488_vm3 = vcmask 7168  }
  0x30   :  { %421 = vmatpush.bf16.msrb.mxu0 %v536_v11  ;;  %434 = vmatpush.bf16.msrb.mxu1 %v600_v15  ;;  %v251_v11 = vld [vmem:[%s903_s6] sm:$0x3] }
  0x31   :  { %v253_v12 = vperm.slane %v251_v11, 0  ;;  %v254_v18 = vperm.slane %v251_v11, 1  ;;  %v475_v21 = vperm.slane %v472_v17, 2 }
  0x33   :  { %447 = vmatpush.bf16.msrb.mxu2 %v540_v16  ;;  %460 = vmatpush.bf16.msrb.mxu3 %v604_v20  ;;  %v474_v20 = vperm.slane %v472_v17, 0  ;;  %v479_v30 = vperm.slane %v475_v21, 0 }
  0x34   :  { %422 = vmatpush.bf16.msrb.mxu0 %v528_v24  ;;  %435 = vmatpush.bf16.msrb.mxu1 %v592_v25 }
  0x37   :  { %448 = vmatpush.bf16.msrb.mxu2 %v532_v29  ;;  %461 = vmatpush.bf16.msrb.mxu3 %v596_v31  ;;  %v478_v29 = vperm.slane %v474_v20, 0 }
  0x38   :  { %423 = vmatpush.bf16.msrb.mxu0 %v520_v34  ;;  %436 = vmatpush.bf16.msrb.mxu1 %v584_v37  ;;  %v486_v37 = vstv %s905_s8 }
  0x3b   :  { %449 = vmatpush.bf16.msrb.mxu2 %v524_v40  ;;  %462 = vmatpush.bf16.msrb.mxu3 %v588_v43 }
  0x3c   :  { %424 = vmatpush.bf16.msrb.mxu0 %v512_v47  ;;  %437 = vmatpush.bf16.msrb.mxu1 %v576_v51 }
  0x3f   :  { %450 = vmatpush.bf16.msrb.mxu2 %v516_v52  ;;  %463 = vmatpush.bf16.msrb.mxu3 %v580_v55 }
  0x9e   :  { %v139_v56 = vpop.f32.mrf.mxu0  ;;  %v152_v57 = vpop.f32.mrf.mxu1 }
  0xa5   :  { %v190_v61 = vpop.f32.mrf.mxu2  ;;  %v203_v0 = vpop.f32.mrf.mxu3 }
  0xa6   :  { %v141_v60 = vpop.f32.mrf.mxu0  ;;  %v191_v63 = vadd.f32 %v190_v61, %v139_v56  ;;  %v154_v1 = vpop.f32.mrf.mxu1  ;;  %v204_v2 = vadd.f32 %v203_v0, %v152_v57 }
  0xa8   :  { %v213_v3 = vadd.f32 %v209_v59, %v191_v63  ;;  %v214_v4 = vadd.f32 %v210_v62, %v204_v2 }
  0xaa   :  { %v215_v5 = vmax.f32 %v213_v3, 0.0  ;;  %v216_v6 = vmax.f32 %v214_v4, 0.0 }
  0xac   :  { %v217_v7 = vpack.c.bf16 %v215_v5, %v215_v5  ;;  %v218_v8 = vpack.c.bf16 %v216_v6, %v216_v6 }
  0xad   :  { %v192_v9 = vpop.f32.mrf.mxu2  ;;  %v205_v10 = vpop.f32.mrf.mxu3 }
  0xae   :  { %425 = vmatmul.bf16.vlgmr.msrb.gmra.mxu0 %v217_v7  ;;  %451 = vmatmul.bf16.vlgmr.msrb.gmra.mxu2 %v217_v7 }
  0xaf   :  { %438 = vmatmul.bf16.vlgmr.msrb.gmra.mxu1 %v218_v8  ;;  %464 = vmatmul.bf16.vlgmr.msrb.gmra.mxu3 %v218_v8 }
 0x12b   :  { %v426_v14 = vpop.f32.mrf.mxu0 }
 0x12c   :  { %v427_v15 = vadd.f32 %v426_v14, %v253_v12  ;;  %v439_v16 = vpop.f32.mrf.mxu1 }
 0x12e   :  { %v440_v19 = vadd.f32 %v439_v16, %v427_v15 }
 0x130   :  { %v469_v26 = vmax.f32 %v440_v19, 0.0 }
 0x131   :  { %v452_v22 = vpop.f32.mrf.mxu2 }
 0x132   :  { %v453_v23 = vadd.f32 %v452_v22, %v254_v18  ;;  %v465_v24 = vpop.f32.mrf.mxu3  ;;  %v480_v32 = vmul.f32 %v478_v29, %v469_v26 }
 0x133   :  { %v428_v25 = vpop.f32.mrf.mxu0 }
 0x134   :  { %v466_v27 = vadd.f32 %v465_v24, %v453_v23  ;;  %v441_v28 = vpop.f32.mrf.mxu1 }
 0x136   :  { %v470_v31 = vmax.f32 %v466_v27, 0.0 }
 0x138   :  { %v481_v33 = vmul.f32 %v479_v30, %v470_v31 }
 0x139   :  { %v454_v34 = vpop.f32.mrf.mxu2 }
 0x13a   :  { %v467_v35 = vpop.f32.mrf.mxu3  ;;  %v482_v36 = vadd.f32 %v481_v33, %v480_v32 }
 0x13c   :  { %483 = vadd.xlane.f32.xlu0 %v482_v36 }
 0x1af   :  { %v484_v38 = vpop.xlane.xlu0 %483 }
 0x1b0   :  { %v487_v39 = vadd.f32 %v486_v37, %v484_v38 }
 0x1b2   :  { %489 = vst.msk [vmem:[%s906_s9] sm:$0xff] %vm488_vm3, %v487_v39 }
 0x1b3   :  { %494 = vsyncpa [#allocation4], 1 }
 0x1b4   :  { %495 = vsyncpa [#allocation6], 1 }
 0x1b5   :  { %496 = vsyncpa [#allocation9], 1 }

</bundles_post_ra>
